<compile_context>
chip_gen: v6e
topology: v6e:2x2x1
jax: 0.10.0
libtpu: 0.0.40
codegen_flags: <defaults>
</compile_context>

<pallas_src>
import functools
import math

import jax
import jax.numpy as jnp
from jax.experimental import pallas as pl
from jax.experimental.pallas import tpu as pltpu


def _linear_bias_kernel(x_ref, w_ref, b_ref, o_ref, *, compute_dtype):
    """One (tm, tn) output tile per grid step: full-K, weight-slab-resident."""
    x = x_ref[...].astype(compute_dtype)          # cast on the VPU (free slack)
    acc = jnp.dot(x, w_ref[...], preferred_element_type=jnp.float32)
    o_ref[...] = (acc + b_ref[...]).astype(o_ref.dtype)


def _round_up(v, m):
    return ((v + m - 1) // m) * m


def linear_pallas(x2d, w_t, bias, *, tm_max=512, compute_dtype=jnp.bfloat16,
                  out_dtype=None):
    """y = x2d @ w_t + bias.

    x2d : [M, K]   (M = prod of leading dims, K = d_model), any float dtype
    w_t : [K, N]   (transposed nn.Linear weight, N = heads * d_k), pre-cast
    bias: [1, N]   f32 (added in the f32 epilogue)
    """
    M, K = x2d.shape
    Kw, N = w_t.shape
    assert Kw == K and bias.shape == (1, N)
    out_dtype = out_dtype or x2d.dtype

    xbytes = jnp.dtype(x2d.dtype).itemsize
    wbytes = jnp.dtype(w_t.dtype).itemsize
    obytes = jnp.dtype(out_dtype).itemsize

    # Physical VMEM capacity (64 MiB on v7x, 128 MiB on v5e/v6e); fall back to
    # the most conservative value if the query is unavailable.
    try:
        vmem_cap = int(pltpu.get_tpu_info().vmem_capacity_bytes)
    except Exception:
        vmem_cap = 64 * 1024 * 1024

    # ---- M tile: large tiles, >=2 blocks so v7x's second TC isn't idle ------
    sub = 16 if xbytes == 2 else 8            # sublane granule for the x tile
    if M <= sub:
        tm = M                                # single tiny block (== full dim)
    elif M <= tm_max:
        tm = _round_up(-(-M // 2), sub)       # split M across both TensorCores
    else:
        tm = tm_max

    # ---- N tile: keep the resident set inside a conservative VMEM budget ----
    budget = min(int(0.5 * vmem_cap), 48 * 1024 * 1024)

    def resident_bytes(tm_, tn_):
        return (2 * tm_ * K * xbytes          # x tiles (double-buffered)
                + 2 * tm_ * tn_ * obytes      # out tiles (double-buffered)
                + 2 * (K * tn_ * wbytes       # weight slab (+ buffer slack)
                       + tn_ * 4))            # bias slab

    tn = N
    while tn > 128 and resident_bytes(tm, tn) > budget:
        tn = max(128, _round_up(tn // 2, 128))
    while tm > sub and resident_bytes(tm, tn) > budget:
        tm = max(sub, _round_up(tm // 2, sub))

    grid_m = pl.cdiv(M, tm)
    grid_n = pl.cdiv(N, tn)

    need = resident_bytes(tm, tn)
    vmem_limit = int(min(max(2 * need, 32 * 1024 * 1024),
                         int(0.75 * vmem_cap)))

    cost = pl.CostEstimate(
        flops=2 * M * K * N,
        transcendentals=0,
        bytes_accessed=(grid_n * M * K * xbytes   # x re-streamed per N slab
                        + K * N * wbytes          # each weight slab read once
                        + N * 4                   # bias
                        + M * N * obytes),        # output writeback
    )

    kernel = functools.partial(_linear_bias_kernel, compute_dtype=compute_dtype)

    y = pl.pallas_call(
        kernel,
        out_shape=jax.ShapeDtypeStruct((M, N), out_dtype),
        grid_spec=pltpu.PrefetchScalarGridSpec(
            num_scalar_prefetch=0,
            # N outermost, M innermost: each W^T N-slab is DMA'd once and
            # stays VMEM-resident across the whole M sweep.
            grid=(grid_n, grid_m),
            in_specs=[
                pl.BlockSpec((tm, K), lambda n, m: (m, 0)),   # x tile streams over M
                pl.BlockSpec((K, tn), lambda n, m: (0, n)),   # W^T slab resident
                pl.BlockSpec((1, tn), lambda n, m: (0, n)),   # bias slab resident
            ],
            out_specs=pl.BlockSpec((tm, tn), lambda n, m: (m, n)),  # lane-dense
        ),
        compiler_params=pltpu.CompilerParams(
            dimension_semantics=("parallel", "parallel"),  # megacore sharding
            vmem_limit_bytes=vmem_limit,
        ),
        cost_estimate=cost,
    )(x2d, w_t, bias)

    return y


class PrepareForMultiHeadAttention:
    """JAX/Pallas port of the PyTorch module (deterministic init)."""

    def __init__(self, d_model: int, heads: int, d_k: int, bias: bool, key,
                 compute_dtype=jnp.bfloat16, out_dtype=None):
        self.d_model = d_model
        self.heads = heads
        self.d_k = d_k
        self.use_bias = bias
        self.compute_dtype = compute_dtype
        self.out_dtype = out_dtype           # None -> keep x.dtype
        out_features = heads * d_k

        k_w, k_b = jax.random.split(key)
        # Mimic nn.Linear default init (Kaiming-uniform-ish) deterministically.
        bound_w = 1.0 / math.sqrt(d_model)
        # PyTorch stores weight as [out_features, in_features]; we keep W^T
        # ([in, out]) since the kernel computes x @ W^T.  Pre-cast ONCE to the
        # compute dtype so no per-call cast pass is emitted.
        self.w_t = jax.random.uniform(
            k_w, (d_model, out_features), jnp.float32, -bound_w, bound_w
        ).astype(compute_dtype)
        if bias:
            self.b = jax.random.uniform(
                k_b, (1, out_features), jnp.float32, -bound_w, bound_w
            ).astype(jnp.float32)
        else:
            # bias=False: zero bias still flows through the fused epilogue
            # (numerically harmless; keeps a single kernel for both configs).
            self.b = jnp.zeros((1, out_features), jnp.float32)

    def __call__(self, x):
        head_shape = x.shape[:-1]
        x2d = x.reshape(-1, self.d_model)
        y2d = linear_pallas(
            x2d, self.w_t, self.b,
            compute_dtype=self.compute_dtype,
            out_dtype=self.out_dtype or x.dtype,
        )
        return y2d.reshape(*head_shape, self.heads, self.d_k)


if __name__ == "__main__":
    key = jax.random.PRNGKey(0)
    k_param, k_x = jax.random.split(key)

    seq, batch = 8, 2
    d_model, heads, d_k = 128, 4, 32          # heads * d_k = 128

    module = PrepareForMultiHeadAttention(d_model, heads, d_k, bias=True, key=k_param)

    x = jax.random.normal(k_x, (seq, batch, d_model), jnp.float32)

    out = module(x)
    out = jax.block_until_ready(out)

    # Reference check in plain JAX (same bf16-rounded operands, f32 accumulation).
    x_ref = x.astype(jnp.bfloat16).astype(jnp.float32)
    w_ref = module.w_t.astype(jnp.float32)
    ref = (x_ref.reshape(-1, d_model) @ w_ref + module.b).reshape(
        seq, batch, heads, d_k
    )
    assert out.shape == (seq, batch, heads, d_k)
    assert out.dtype == x.dtype
    assert jnp.allclose(out, ref, atol=2e-3, rtol=2e-3)

    # Sanity check vs. a pure-f32 reference (bf16 rounding error only).
    w_f32 = module.w_t.astype(jnp.float32)
    ref_f32 = (x.reshape(-1, d_model) @ w_f32 + module.b).reshape(
        seq, batch, heads, d_k
    )
    assert jnp.allclose(out, ref_f32, atol=5e-2, rtol=5e-2)

    print("KERNEL_OK")
</pallas_src>

<mosaic_0001>
module attributes {stable_mosaic.version = 11 : i64} {
  func.func @_linear_bias_kernel(%arg0: i32, %arg1: i32, %arg2: memref<8x128xf32, #tpu.memory_space<vmem>>, %arg3: memref<128x128xbf16, #tpu.memory_space<vmem>>, %arg4: memref<1x128xf32, #tpu.memory_space<vmem>>, %arg5: memref<8x128xf32, #tpu.memory_space<vmem>>) attributes {dimension_semantics = [#tpu.dimension_semantics<parallel>, #tpu.dimension_semantics<parallel>], iteration_bounds = array<i64: 1, 2>, scalar_prefetch = 0 : i64, scratch_operands = 0 : i64, tpu.core_type = #tpu.core_type<tc>, window_params = [{transform_indices = @transform_0, window_bounds = array<i64: 8, 128>}, {transform_indices = @transform_1, window_bounds = array<i64: 128, 128>}, {transform_indices = @transform_2, window_bounds = array<i64: 1, 128>}, {transform_indices = @transform_3, window_bounds = array<i64: 8, 128>}]} {
    %c0 = arith.constant 0 : index
    %c0_0 = arith.constant 0 : index
    %0 = vector.load %arg2[%c0, %c0_0] : memref<8x128xf32, #tpu.memory_space<vmem>>, vector<8x128xf32>
    %1 = arith.truncf %0 : vector<8x128xf32> to vector<8x128xbf16>
    %c0_1 = arith.constant 0 : index
    %c0_2 = arith.constant 0 : index
    %2 = vector.load %arg3[%c0_1, %c0_2] : memref<128x128xbf16, #tpu.memory_space<vmem>>, vector<128x128xbf16>
    %cst = arith.constant dense<0.000000e+00> : vector<8x128xf32>
    %3 = tpu.matmul %1, %2, %cst {dimension_numbers = #tpu.dot_dimension_numbers<[1], [0], [0], [1], [0, 0, 1, 1], [], []>} : vector<8x128xbf16>, vector<128x128xbf16>, vector<8x128xf32> -> vector<8x128xf32>
    %c0_3 = arith.constant 0 : index
    %c0_4 = arith.constant 0 : index
    %4 = vector.load %arg4[%c0_3, %c0_4] : memref<1x128xf32, #tpu.memory_space<vmem>>, vector<1x128xf32>
    %5 = vector.broadcast %4 : vector<1x128xf32> to vector<8x128xf32>
    %6 = arith.addf %3, %5 : vector<8x128xf32>
    %c0_5 = arith.constant 0 : index
    %c0_6 = arith.constant 0 : index
    %7 = vector.load %arg5[%c0_5, %c0_6] : memref<8x128xf32, #tpu.memory_space<vmem>>, vector<8x128xf32>
    tpu.vector_store %arg5[%c0_5, %c0_6], %6 {strides = array<i32>} : memref<8x128xf32, #tpu.memory_space<vmem>>, vector<8x128xf32>,
    return
  }
  func.func @transform_0(%arg0: i32, %arg1: i32) -> (i32, i32) {
    %c0_i32 = arith.constant 0 : i32
    %c0_i32_0 = arith.constant 0 : i32
    return %arg1, %c0_i32 : i32, i32
  }
  func.func @transform_1(%arg0: i32, %arg1: i32) -> (i32, i32) {
    %c0_i32 = arith.constant 0 : i32
    %c0_i32_0 = arith.constant 0 : i32
    return %c0_i32, %arg0 : i32, i32
  }
  func.func @transform_2(%arg0: i32, %arg1: i32) -> (i32, i32) {
    %c0_i32 = arith.constant 0 : i32
    %c0_i32_0 = arith.constant 0 : i32
    return %c0_i32, %arg0 : i32, i32
  }
  func.func @transform_3(%arg0: i32, %arg1: i32) -> (i32, i32) {
    %c0_i32 = arith.constant 0 : i32
    return %arg1, %arg0 : i32, i32
  }
}

</mosaic_0001>

<bundles_post_ra>
// kernel: tpu_custom_call.1
= control target key start
LH: loop header
LB: loop body
LE: loop exit
PB: predicated region body
PF: predicated region fallthrough
CT: control target
= control target key end

     0   :  { %8 = vsyncpa [#allocation3], 0  ;;  %s961_s0 = inlined_call_operand.hbm [shape: f32[16,128], index: 0, kind: input, shape index: {}]   ;;  %s962_s1 = inlined_call_operand.hbm [shape: bf16[128,128], index: 1, kind: input, shape index: {}]   ;;  %s963_s2 = inlined_call_operand.vmem [shape: f32[1,128], index: 2, kind: input, shape index: {}]   ;;  %s964_s3 = inlined_call_operand.hbm [shape: f32[16,128], index: 3, kind: output, shape index: {}]  }
   0x1   :  { %10 = vsyncpa [#allocation3 + $0x1], 0 }
   0x2   :  { %11 = vsyncpa [#allocation6], 0 }
   0x3   :  { %12 = vsyncpa [#allocation4], 0 }
   0x4   :  { %14 = vsyncpa [#allocation4 + $0x1], 0  ;;  %s775_s12 = smov 0   ;;  %s777_s13 = smov 0  }
   0x5   :  { %s779_s14 = smov 0   ;;  %s781_s15 = smov 0  }
   0x6   :  { %s783_s16 = smov 0   ;;  %s785_s17 = smov 0  }
   0x7 LB: > { %s469_s18 = sadd.s32 4294967295, %s746_s17   ;;  %s470_s19 = sadd.s32 4294967294, %s746_s17   ;;  %s746_s17 = sphi %s785_s17, %s20_s17   ;;  %s742_s16 = sphi %s783_s16, %s982_s16   ;;  %s738_s15 = sphi %s781_s15, %s981_s15   ;;  %s734_s14 = sphi %s779_s14, %s980_s14   ;;  %s730_s13 = sphi %s777_s13, %s979_s13   ;;  %s726_s12 = sphi %s775_s12, %s978_s12  }
   0x8   : > { %p52_p0 = scmp.ne.s32.totalorder %s730_s13, %s726_s12  ;;  %p809_p1 = scmp.eq.s32.totalorder %s469_s18, 0 }
   0x9   : > { %p813_p2 = scmp.eq.s32.totalorder %s469_s18, 1  ;;  %p136_p3 = scmp.eq.s32.totalorder %s470_s19, 1 }
   0xa   : > { %p819_p4 = por %p809_p1, %p52_p0  ;;  %p471_p5 = scmp.ge.s32.totalorder %s746_s17, 1 }
   0xb   : > { %p824_p6 = por %p136_p3, %p52_p0  ;;  %p143_p7 = scmp.lt.s32.totalorder %s746_s17, 3 }
   0xc   : > { %s968_s22 = scalar_select %p819_p4, 1, 0 }
   0xd   : > { %s969_s23 = scalar_select %p824_p6, 1, 0 }
   0xe   : > { %p829_p8 = pnand %p471_p5, %p143_p7  ;;  %s748_s25 = smov [#allocation5]  }
   0xf   : > { %s157_s26 = sshll.u32 %s748_s25, 4  ;;  %s29_s28 = sadd.s32 1, %s742_s16  ;;  %s158_s26 = int_to_ptr.vmem [resolvable:$true] %s157_s26 }
  0x10   : > { %p531_p9 = pneg %p829_p8  ;;  %s619_s29 = scalar_lea.vmem %s158_s26, 1024 }
  0x11   : > { %p620_p13 = scmp.ne.s32.totalorder %s158_s26, %s619_s29  ;;  %p627_p5 = scmp.lt.s32.totalorder %s158_s26, %s158_s26 }
  0x12   : > { %p838_p11 = pnand %p531_p9, %p809_p1  ;;  %p628_p7 = scmp.lt.s32.totalorder %s619_s29, %s619_s29 }
  0x14   : > { %p610_p12 = pneg %p838_p11  ;;  %p629_p6 = por %p628_p7, %p627_p5 }
  0x16   : > { %p622_p0 = pnand %p620_p13, %p610_p12 }
  0x18   : > { %p623_p3 = pneg %p622_p0 }
  0x1a   : > { %p630_p4 = pnand %p629_p6, %p623_p3 }
  0x1c   : > { %633 = shalt.err (!%p630_p4)
}
  0x1d   : > { %s749_s30 = smov 64   ;;  %s750_s4 = smov 4  }
  0x1e   : > { %534 = dma.hbm_to_vmem [thread:$0]  (!%p838_p11), %s962_s1, 1024, %s158_s26, [#allocation6], %s749_s30, %s749_s30, %s750_s4  }
  0x1f   : > { %p30_p6 = scmp.ge.s32.totalorder %s29_s28, 2  ;;  %s39_s7 = sadd.s32 1, %s734_s14 }
  0x20   : > { %p46_p4 = scmp.ne.s32.totalorder %s734_s14, %s730_s13  ;;  %p47_p9 = scmp.eq.s32.totalorder %s746_s17, 0 }
  0x21   : > { %s984_s28 = smov (%p30_p6, %s29_s28), 0  ;;  %p544_p0 = scmp.lt.s32.totalorder %s746_s17, 2 }
  0x22   : > { %p856_p12 = por %p47_p9, %p46_p4  ;;  %p862_p13 = por %p813_p2, %p46_p4 }
  0x23   : > { %s36_s10 = ssub.s32 %s742_s16, %s984_s28  ;;  %s177_s11 = sand.u32 1, %s734_s14  }
  0x24   : > { %p37_p11 = scmp.eq.s32.totalorder %s36_s10, 0  ;;  %s475_s18 = sshll.u32 %s177_s11, 3 }
  0x25   : > { %s476_s25 = sshll.u32 %s742_s16, 7  ;;  %s181_s30 = scalar_lea.vmem [#allocation2], %s475_s18 }
  0x26   : > { %s871_s19 = scalar_select %p37_p11, %s734_s14, %s39_s7  }
  0x27   : > { %s186_s29 = scalar_lea.hbm %s961_s0, %s476_s25  ;;  %s188_s4 = sshll.u32 %s181_s30, 4  ;;  %s189_s4 = int_to_ptr.vmem [resolvable:$true] %s188_s4 }
  0x28   : > { %p879_p2 = pnand %p544_p0, %p856_p12  ;;  %s178_s5 = scalar_lea.sflag [#allocation3], %s177_s11 }
  0x29   : > { %s647_s6 = scalar_lea.vmem %s189_s4, 128  ;;  %s751_s7 = smov [#allocation2]  }
  0x2a   : > { %p636_p3 = pneg %p879_p2  ;;  %p648_p5 = scmp.ne.s32.totalorder %s189_s4, %s647_s6 }
  0x2b   : > { %s652_s10 = sshll.u32 %s751_s7, 4  ;;  %s653_s10 = int_to_ptr.vmem [resolvable:$false] %s652_s10 }
  0x2c   : > { %p650_p7 = pnand %p648_p5, %p636_p3  ;;  %s654_s25 = scalar_lea.vmem %s653_s10, 256 }
  0x2d   : > { %p655_p4 = scmp.lt.s32.totalorder %s189_s4, %s653_s10  ;;  %p656_p9 = scmp.lt.s32.totalorder %s654_s25, %s647_s6 }
  0x2e   : > { %p651_p6 = pneg %p650_p7 }
  0x2f   : > { %p657_p11 = por %p656_p9, %p655_p4 }
  0x31   : > { %p658_p10 = pnand %p657_p11, %p651_p6 }
  0x33   : > { %661 = shalt.err (!%p658_p10)
}
  0x34   : > { %538 = dma.hbm_to_vmem [thread:$0]  (!%p879_p2), %s186_s29, 128, %s189_s4, %s178_s5  }
  0x35   : > { %197 = sbr.rel (%p829_p8) target bundleno = 303 (0x12f), region = 32  ;;  %s890_s8 = sand.u32 (!%p829_p8), 1, %s730_s13  }
  0x36   : > { %s478_s11 = sshll.u32 (!%p829_p8), %s890_s8, 3  ;;  %s200_s18 = scalar_lea.sflag (!%p829_p8), [#allocation3], %s890_s8 }
  0x37   : > { %s203_s26 = scalar_lea.vmem (!%p829_p8), [#allocation2], %s478_s11  ;;  %p975_p12 = scmp.ne.s32.totalorder (!%p829_p8), %s968_s22, 0 }
  0x3a   : > { %713 = dma.done.wait (%p975_p12), %s200_s18, 128  }
  0x3b   : > { %715 = vsyncadd (%p975_p12), %s200_s18, 4294967168 }
  0x3c   : > { %717 = dma.done.wait (%p809_p1), [#allocation6], 1024  }
  0x3d   : > { %719 = vsyncadd (%p809_p1), [#allocation6], 4294966272  ;;  %v752_v0 = vmov 0.0   ;;  %vm753_vm0 = vmmov 0   ;;  %v600_v1 = vld [vmem:[#allocation5 + $0x38] sm:$0xff]   ;;  %v601_v2 = vld [vmem:[#allocation5 + $0x30] sm:$0xff]  }
  0x3e   : > { %503 = vmatprep.subr.bf16.mxu0 %v752_v0  ;;  %519 = vmatprep.mubr.msk.bf16.mxu0 %vm753_vm0, %v752_v0  ;;  %v602_v3 = vld [vmem:[#allocation5 + $0x28] sm:$0xff]   ;;  %v603_v4 = vld [vmem:[#allocation5 + $0x20] sm:$0xff]   ;;  %v604_v5 = vld [vmem:[#allocation5 + $0x18] sm:$0xff]   ;;  %s491_s24 = sshll.u32 %s738_s15, 7  ;;  %s232_s27 = scalar_lea.vmem [#allocation7], %s478_s11 }
  0x3f   : > { %504 = vmatpush3.bf16.msra.mxu0 %v600_v1  ;;  %v605_v6 = vld [vmem:[#allocation5 + $0x10] sm:$0xff]   ;;  %v606_v7 = vld [vmem:[#allocation5 + $0x8] sm:$0xff]   ;;  %v607_v8 = vld [vmem:[#allocation5] sm:$0xff]   ;;  %s366_s29 = sshll.u32 %s232_s27, 4  ;;  %s913_s21 = scalar_lea.hbm %s964_s3, %s491_s24  ;;  %s915_s29 = int_to_ptr.vmem [resolvable:$true] %s366_s29 }
  0x40   : > { %505 = vmatprep.subr.bf16.mxu0 %v752_v0  ;;  %v237_v9 = vld [vmem:[%s203_s26] sm:$0xff]  ;;  %s352_s5 = scalar_lea.sflag [#allocation4], %s890_s8  ;;  %s662_s15 = scalar_lea.vmem %s915_s29, 128 }
  0x41   : > { %v238_v10 = vpack.c.bf16 %v237_v9, %v237_v9  ;;  %v481_v11 = vld [vmem:[%s963_s2] ss:$0 sm:$0xff]  ;;  %p663_p1 = scmp.ne.s32.totalorder %s915_s29, %s662_s15  ;;  %s754_s6 = smov [#allocation7]  }
  0x42   : > { %s666_s7 = sshll.u32 %s754_s6, 4  ;;  %s667_s7 = int_to_ptr.vmem [resolvable:$false] %s666_s7 }
  0x43   : > { %506 = vmatpush3.bf16.msra.mxu0 %v601_v2  ;;  %p664_p8 = pnand %p663_p1, %p862_p13  ;;  %s668_s10 = scalar_lea.vmem %s667_s7, 256 }
  0x44   : > { %507 = vmatprep.subr.bf16.mxu0 %v752_v0  ;;  %p669_p0 = scmp.lt.s32.totalorder %s915_s29, %s667_s7  ;;  %p670_p2 = scmp.lt.s32.totalorder %s668_s10, %s662_s15 }
  0x45   : > { %p665_p10 = pneg %p664_p8 }
  0x46   : > { %p671_p3 = por %p670_p2, %p669_p0 }
  0x47   : > { %508 = vmatpush3.bf16.msra.mxu0 %v602_v3 }
  0x48   : > { %509 = vmatprep.subr.bf16.mxu0 %v752_v0  ;;  %p672_p5 = pnand %p671_p3, %p665_p10 }
  0x4b   : > { %510 = vmatpush3.bf16.msra.mxu0 %v603_v4 }
  0x4c   : > { %511 = vmatprep.subr.bf16.mxu0 %v752_v0 }
  0x4f   : > { %512 = vmatpush3.bf16.msra.mxu0 %v604_v5 }
  0x50   : > { %513 = vmatprep.subr.bf16.mxu0 %v752_v0 }
  0x53   : > { %514 = vmatpush3.bf16.msra.mxu0 %v605_v6 }
  0x54   : > { %515 = vmatprep.subr.bf16.mxu0 %v752_v0 }
  0x57   : > { %516 = vmatpush3.bf16.msra.mxu0 %v606_v7 }
  0x58   : > { %517 = vmatprep.subr.bf16.mxu0 %v752_v0 }
  0x5b   : > { %518 = vmatpush3.bf16.msra.mxu0 %v607_v8 }
  0x5e   : > { %520 = vmatmul.mubr.bf16.vlgmr.msra.gmra.mxu0 %v238_v10 }
 0x11e   : > { %v344_v12 = vpop.f32.mrf.mxu0 }
 0x11f   : > { %v345_v13 = vadd.f32 %v481_v11, %v344_v12 }
 0x120   : > { %v521_v14 = vpop.f32.mrf.mxu0 }
 0x121   : > { %350 = vst [vmem:[%s232_s27] sm:$0xff] %v345_v13 }
 0x122   : > { %v347_v15 = vpop.f32.mrf.mxu0 }
 0x123   : > { %675 = shalt.err (!%p672_p5)
}
 0x124   : > { %s676_s25 = scalar_lea.hbm %s913_s21, 128  ;;  %s680_s18 = scalar_lea.hbm %s964_s3, 256 }
 0x125   : > { %p677_p7 = scmp.ne.s32.totalorder %s913_s21, %s676_s25  ;;  %p681_p9 = scmp.lt.s32.totalorder %s913_s21, %s964_s3 }
 0x126   : > { %p682_p11 = scmp.lt.s32.totalorder %s680_s18, %s676_s25 }
 0x127   : > { %p678_p6 = pnand %p677_p7, %p862_p13 }
 0x128   : > { %p683_p12 = por %p682_p11, %p681_p9 }
 0x129   : > { %p679_p4 = pneg %p678_p6 }
 0x12b   : > { %p684_p1 = pnand %p683_p12, %p679_p4 }
 0x12d   : > { %687 = shalt.err (!%p684_p1)
}
 0x12e   : > { %529 = dma.vmem_to_hbm [thread:$0]  (%p862_p13), %s915_s29, 128, %s913_s21, %s352_s5   ;;  %v522_v16 = vpop.f32.mrf.mxu0 }
 0x12f PF: > { %s378_s22 = sand.u32 1, %s726_s12   ;;  %p976_p8 = scmp.ne.s32.totalorder %s969_s23, 0 }
 0x130   : > { %p977_p10 = scmp.ge.s32.totalorder %s746_s17, 2  ;;  %s379_s24 = scalar_lea.sflag [#allocation4], %s378_s22 }
 0x132   : > { %p540_p0 = pnand %p977_p10, %p976_p8 }
 0x134   : > { %p541_p2 = pneg %p540_p0 }
 0x136   : > { %721 = dma.done.wait (%p541_p2), %s379_s24, 128  }
 0x137   : > { %723 = vsyncadd (%p541_p2), %s379_s24, 4294967168  ;;  %s20_s17 = sadd.s32 1, %s746_s17   ;;  %s978_s12 = smov %s730_s13 }
 0x138   : > { %p17_p3 = scmp.ge.s32.totalorder %s20_s17, 4   ;;  %s979_s13 = smov %s734_s14 }
 0x139   : > { %s980_s14 = smov %s871_s19  ;;  %s981_s15 = smov %s742_s16 }
 0x13a   : > { %s982_s16 = smov %s984_s28  ;;  %19 = sbr.rel (!%p17_p3) target bundleno = 7 (0x7), region = 85 }
 0x13f   :  { %384 = vsyncpa [#allocation3], 1 }
 0x140   :  { %386 = vsyncpa [#allocation3 + $0x1], 1 }
 0x141   :  { %387 = vsyncpa [#allocation6], 1 }
 0x142   :  { %388 = vsyncpa [#allocation4], 1 }
 0x143   :  { %390 = vsyncpa [#allocation4 + $0x1], 1 }

</bundles_post_ra>
